<compile_context>
chip_gen: v7x
topology: tpu7x:2x2x1
jax: 0.10.0
libtpu: 0.0.40
codegen_flags: <defaults>
</compile_context>

<pallas_src>
import functools

import jax
import jax.numpy as jnp
from jax.experimental import pallas as pl
from jax.experimental.pallas import tpu as pltpu


# ----------------------------------------------------------------------------
# MultimodalEncoder: one fused kernel for the whole BertLayer stack.
# ----------------------------------------------------------------------------
def multimodal_encoder_kernel(
    hidden_ref,    # (1, S, H)        input hidden_states (read only at layer 0)
    mask_ref,      # (1, 1, 1, S)     extended additive attention mask
    w_qkv_ref,     # (1, H, 3H)       packed Q|K|V weight for this layer
    b_qkv_ref,     # (1, 1, 3H)
    w_ao_ref,      # (1, H, H)        attention output dense
    b_ao_ref,      # (1, 1, H)
    w_ff1_ref,     # (1, H, I)        intermediate dense
    b_ff1_ref,     # (1, 1, I)
    w_ff2_ref,     # (1, I, H)        output dense
    b_ff2_ref,     # (1, 1, H)
    ln_ref,        # (1, 4, H)        rows: ln1_gamma, ln1_beta, ln2_gamma, ln2_beta
    hid_out_ref,   # (1, 1, S, H)     hidden_states after this layer
    attn_out_ref,  # (1, 1, nH, S, S) attention probabilities of this layer
    h_scratch,     # VMEM (S, H) f32  hidden state carried across the layer axis
    *, num_heads, head_dim, eps,
):
    layer = pl.program_id(1)

    @pl.when(layer == 0)
    def _():
        h_scratch[...] = hidden_ref[0].astype(jnp.float32)

    h = h_scratch[...]                                   # [S, H] f32
    hdim = h.shape[-1]

    # ---- packed QKV projection: a single MXU pass per layer -----------------
    qkv = jnp.dot(h, w_qkv_ref[0], preferred_element_type=jnp.float32) \
        + b_qkv_ref[0]                                   # [S, 3H]

    mask = mask_ref[0, 0, :, :].astype(jnp.float32)      # [1, S] additive mask
    inv_sqrt_dh = head_dim ** -0.5

    ctx_heads = []
    for hd in range(num_heads):
        lo = hd * head_dim
        hi = lo + head_dim
        # Scale Q (cheaper than scaling the [S, S] score matrix).
        qh = qkv[:, lo:hi] * inv_sqrt_dh                 # [S, dh]
        kh = qkv[:, hdim + lo:hdim + hi]
        vh = qkv[:, 2 * hdim + lo:2 * hdim + hi]

        # scores = (Q / sqrt(dh)) K^T + mask   (contract last dims, no transpose)
        scores = jax.lax.dot_general(
            qh, kh, (((1,), (1,)), ((), ())),
            preferred_element_type=jnp.float32)
        scores = scores + mask                           # [S, S]

        m = jnp.max(scores, axis=-1, keepdims=True)
        e = jnp.exp(scores - m)
        probs = e * pl.reciprocal(jnp.sum(e, axis=-1, keepdims=True), approx=True)

        attn_out_ref[0, 0, hd, :, :] = probs.astype(attn_out_ref.dtype)
        ctx_heads.append(jnp.dot(probs, vh, preferred_element_type=jnp.float32))

    ctx = jnp.concatenate(ctx_heads, axis=-1)            # [S, H]

    def layer_norm(x, gamma, beta):
        mu = jnp.mean(x, axis=-1, keepdims=True)
        xc = x - mu
        var = jnp.mean(xc * xc, axis=-1, keepdims=True)
        return xc * jax.lax.rsqrt(var + eps) * gamma + beta

    ln = ln_ref[0]                                       # [4, H]

    # attention output dense + residual + LayerNorm (dropout = identity in eval)
    attn_dense = jnp.dot(ctx, w_ao_ref[0], preferred_element_type=jnp.float32) \
        + b_ao_ref[0]
    h1 = layer_norm(attn_dense + h, ln[0:1, :], ln[1:2, :])

    # feed-forward (GELU) + residual + LayerNorm
    # TODO(synk): BertLayer is an external class; its exact GELU variant (erf vs
    # tanh) is not specified here — the tanh approximation is used (EUP-friendly).
    inter = jnp.dot(h1, w_ff1_ref[0], preferred_element_type=jnp.float32) \
        + b_ff1_ref[0]
    inter = jax.nn.gelu(inter, approximate=True)
    ff = jnp.dot(inter, w_ff2_ref[0], preferred_element_type=jnp.float32) \
        + b_ff2_ref[0]
    h2 = layer_norm(ff + h1, ln[2:3, :], ln[3:4, :])

    h_scratch[...] = h2
    hid_out_ref[0, 0, :, :] = h2.astype(hid_out_ref.dtype)


def multimodal_encoder(hidden_states, attention_mask, params, *,
                       num_heads, eps=1e-12, output_all_encoded_layers=True):
    """Forward of MultimodalEncoder: returns (all_encoder_layers, all_attentions)."""
    B, S, H = hidden_states.shape
    L = params["w_qkv"].shape[0]
    I = params["w_ff1"].shape[-1]
    nH = num_heads
    dh = H // nH

    kernel = functools.partial(multimodal_encoder_kernel,
                               num_heads=nH, head_dim=dh, eps=eps)

    per_layer3 = lambda b, l: (l, 0, 0)

    all_hidden, all_attn = pl.pallas_call(
        kernel,
        out_shape=(
            jax.ShapeDtypeStruct((L, B, S, H), hidden_states.dtype),
            jax.ShapeDtypeStruct((L, B, nH, S, S), jnp.float32),
        ),
        grid_spec=pltpu.PrefetchScalarGridSpec(
            num_scalar_prefetch=0,
            grid=(B, L),                         # batch parallel, layers sequential
            in_specs=[
                pl.BlockSpec((1, S, H), lambda b, l: (b, 0, 0)),
                pl.BlockSpec((1, 1, 1, S), lambda b, l: (b, 0, 0, 0)),
                pl.BlockSpec((1, H, 3 * H), per_layer3),
                pl.BlockSpec((1, 1, 3 * H), per_layer3),
                pl.BlockSpec((1, H, H), per_layer3),
                pl.BlockSpec((1, 1, H), per_layer3),
                pl.BlockSpec((1, H, I), per_layer3),
                pl.BlockSpec((1, 1, I), per_layer3),
                pl.BlockSpec((1, I, H), per_layer3),
                pl.BlockSpec((1, 1, H), per_layer3),
                pl.BlockSpec((1, 4, H), per_layer3),
            ],
            out_specs=(
                pl.BlockSpec((1, 1, S, H), lambda b, l: (l, b, 0, 0)),
                pl.BlockSpec((1, 1, nH, S, S), lambda b, l: (l, b, 0, 0, 0)),
            ),
            scratch_shapes=[pltpu.VMEM((S, H), jnp.float32)],
        ),
        compiler_params=pltpu.CompilerParams(
            dimension_semantics=("parallel", "arbitrary")),
    )(hidden_states, attention_mask,
      params["w_qkv"], params["b_qkv"], params["w_ao"], params["b_ao"],
      params["w_ff1"], params["b_ff1"], params["w_ff2"], params["b_ff2"],
      params["ln"])

    all_encoder_layers = [all_hidden[l] for l in range(L)]
    all_encoder_attentions = [all_attn[l] for l in range(L)]
    if not output_all_encoded_layers:
        all_encoder_layers = [all_encoder_layers[-1]]
    return all_encoder_layers, all_encoder_attentions


def multimodal_encoder_ref(hidden_states, attention_mask, params, *,
                           num_heads, eps=1e-12):
    """Plain-JAX reference of the same stack, for the correctness check."""
    B, S, H = hidden_states.shape
    L = params["w_qkv"].shape[0]
    dh = H // num_heads

    def ln_ref(x, gamma, beta):
        mu = jnp.mean(x, axis=-1, keepdims=True)
        var = jnp.mean((x - mu) ** 2, axis=-1, keepdims=True)
        return (x - mu) / jnp.sqrt(var + eps) * gamma + beta

    h = hidden_states.astype(jnp.float32)
    layers, attns = [], []
    for l in range(L):
        qkv = h @ params["w_qkv"][l] + params["b_qkv"][l]
        q, k, v = qkv[..., :H], qkv[..., H:2 * H], qkv[..., 2 * H:]
        split = lambda x: x.reshape(B, S, num_heads, dh).transpose(0, 2, 1, 3)
        qh, kh, vh = split(q), split(k), split(v)
        scores = jnp.einsum("bhqd,bhkd->bhqk", qh, kh) * (dh ** -0.5) + attention_mask
        probs = jax.nn.softmax(scores, axis=-1)
        ctx = jnp.einsum("bhqk,bhkd->bhqd", probs, vh)
        ctx = ctx.transpose(0, 2, 1, 3).reshape(B, S, H)
        attn_dense = ctx @ params["w_ao"][l] + params["b_ao"][l]
        h1 = ln_ref(attn_dense + h, params["ln"][l, 0], params["ln"][l, 1])
        inter = jax.nn.gelu(h1 @ params["w_ff1"][l] + params["b_ff1"][l],
                            approximate=True)
        ff = inter @ params["w_ff2"][l] + params["b_ff2"][l]
        h2 = ln_ref(ff + h1, params["ln"][l, 2], params["ln"][l, 3])
        layers.append(h2)
        attns.append(probs)
        h = h2
    return layers, attns


# ----------------------------------------------------------------------------
# FED fusion/classification head (downstream of this encoder in model/FED.py):
# one packed matmul, 3 operands.
# ----------------------------------------------------------------------------
def fed_head_kernel(xpack_ref, w_ref, b_ref, out_ref, *, batch):
    x = xpack_ref[...].astype(jnp.float32)               # [2B, D]  (text ; image)
    # Single MXU pass for att-weight + all three classifiers.
    z = jnp.dot(x, w_ref[...], preferred_element_type=jnp.float32) + b_ref[...]
    zt = z[:batch]                                       # per-text-row logits
    zi = z[batch:]                                       # per-image-row logits

    # Gating softmax over (text_weight, image_weight).
    tl, il = zt[:, 0:1], zi[:, 0:1]
    m = jnp.maximum(tl, il)
    et, ei = jnp.exp(tl - m), jnp.exp(il - m)
    inv = pl.reciprocal(et + ei, approx=True)
    tw, iw = et * inv, ei * inv

    # Linearity (tw + iw == 1):
    #   (tw*text + iw*img) @ W_fuse + b_fuse == tw*(text@W_fuse+b_fuse) + iw*(img@W_fuse+b_fuse)
    logits_fuse = tw * zt[:, 1:3] + iw * zi[:, 1:3]
    logits_text = zt[:, 3:5]
    logits_img = zi[:, 5:7]

    def softmax2(l):
        mm = jnp.max(l, axis=-1, keepdims=True)
        e = jnp.exp(l - mm)
        return e * pl.reciprocal(jnp.sum(e, axis=-1, keepdims=True), approx=True)

    score = softmax2(logits_fuse) + softmax2(logits_text) + softmax2(logits_img)
    out_ref[...] = pl.reciprocal(1.0 + jnp.exp(-score), approx=True).astype(out_ref.dtype)


def fed_head(text_feat, img_feat, p):
    B, D = text_feat.shape
    x = jnp.concatenate([text_feat, img_feat], axis=0)                     # [2B, D]
    w = jnp.concatenate([p["w_att"], p["w_fuse"], p["w_text"], p["w_img"],
                         jnp.zeros((D, 1), jnp.float32)], axis=1)          # [D, 8]
    b = jnp.concatenate([p["b_att"], p["b_fuse"], p["b_text"], p["b_img"],
                         jnp.zeros((1, 1), jnp.float32)], axis=1)          # [1, 8]
    vmem = pl.BlockSpec(memory_space=pltpu.MemorySpace.VMEM)
    return pl.pallas_call(
        functools.partial(fed_head_kernel, batch=B),
        out_shape=jax.ShapeDtypeStruct((B, 2), jnp.float32),
        in_specs=[vmem, vmem, vmem],
        out_specs=vmem,
    )(x, w, b)


def fed_head_ref(text_feat, img_feat, p):
    tw_l = text_feat @ p["w_att"] + p["b_att"]
    iw_l = img_feat @ p["w_att"] + p["b_att"]
    att = jax.nn.softmax(jnp.stack((tw_l[:, 0], iw_l[:, 0]), axis=-1), axis=-1)
    tw, iw = att[:, 0:1], att[:, 1:2]
    fuse = tw * text_feat + iw * img_feat
    lf = fuse @ p["w_fuse"] + p["b_fuse"]
    lt = text_feat @ p["w_text"] + p["b_text"]
    li = img_feat @ p["w_img"] + p["b_img"]
    score = jax.nn.softmax(lf, -1) + jax.nn.softmax(lt, -1) + jax.nn.softmax(li, -1)
    return jax.nn.sigmoid(score)


if __name__ == "__main__":
    key = jax.random.PRNGKey(0)
    # Small shapes consistent with the module: batch=2, seq=8, hidden=32,
    # heads=2, intermediate=4*hidden, layer_number=2.
    B, S, H, nH, L = 2, 8, 32, 2, 2
    I = 4 * H

    keys = jax.random.split(key, 16)
    hidden_states = jax.random.normal(keys[0], (B, S, H), jnp.float32)

    # BERT-style extended additive attention mask (1 = attend, 0 = masked).
    raw_mask = jnp.ones((B, S), jnp.float32).at[1, S - 2:].set(0.0)
    ext_mask = (1.0 - raw_mask)[:, None, None, :] * -10000.0               # [B,1,1,S]

    # TODO(synk): BertLayer(config) is an external pretrained class; its weights
    # are synthesized deterministically here (stored as [in, out]).
    sc = 0.05
    enc_params = {
        "w_qkv": sc * jax.random.normal(keys[1], (L, H, 3 * H), jnp.float32),
        "b_qkv": sc * jax.random.normal(keys[2], (L, 1, 3 * H), jnp.float32),
        "w_ao":  sc * jax.random.normal(keys[3], (L, H, H), jnp.float32),
        "b_ao":  sc * jax.random.normal(keys[4], (L, 1, H), jnp.float32),
        "w_ff1": sc * jax.random.normal(keys[5], (L, H, I), jnp.float32),
        "b_ff1": sc * jax.random.normal(keys[6], (L, 1, I), jnp.float32),
        "w_ff2": sc * jax.random.normal(keys[7], (L, I, H), jnp.float32),
        "b_ff2": sc * jax.random.normal(keys[8], (L, 1, H), jnp.float32),
        "ln": jnp.stack([jnp.ones((L, H), jnp.float32),    # ln1 gamma
                         jnp.zeros((L, H), jnp.float32),   # ln1 beta
                         jnp.ones((L, H), jnp.float32),    # ln2 gamma
                         jnp.zeros((L, H), jnp.float32)],  # ln2 beta
                        axis=1),                            # [L, 4, H]
    }

    enc_layers, enc_attns = multimodal_encoder(
        hidden_states, ext_mask, enc_params, num_heads=nH)
    jax.block_until_ready((enc_layers, enc_attns))

    ref_layers, ref_attns = multimodal_encoder_ref(
        hidden_states, ext_mask, enc_params, num_heads=nH)
    assert len(enc_layers) == L and len(enc_attns) == L
    # Tolerance absorbs the EUP approximate-reciprocal softmax denominators.
    for got, want in zip(enc_layers, ref_layers):
        assert jnp.allclose(got, want, atol=2e-2, rtol=2e-2)
    for got, want in zip(enc_attns, ref_attns):
        assert jnp.allclose(got, want, atol=2e-2, rtol=2e-2)

    # --- FED head on pooled encoder features --------------------------------
    last = enc_layers[-1]
    new_text_feature = jnp.mean(last[:, : S // 2, :], axis=1)               # [B, H]
    new_image_feature = jnp.mean(last[:, S // 2:, :], axis=1)               # [B, H]
    head_params = {
        "w_att": sc * jax.random.normal(keys[9], (H, 1), jnp.float32),
        "b_att": sc * jax.random.normal(keys[10], (1, 1), jnp.float32),
        "w_fuse": sc * jax.random.normal(keys[11], (H, 2), jnp.float32),
        "b_fuse": sc * jax.random.normal(keys[12], (1, 2), jnp.float32),
        "w_text": sc * jax.random.normal(keys[13], (H, 2), jnp.float32),
        "b_text": sc * jax.random.normal(keys[14], (1, 2), jnp.float32),
        "w_img": sc * jax.random.normal(keys[15], (H, 2), jnp.float32),
        "b_img": sc * jax.random.normal(jax.random.fold_in(key, 99), (1, 2), jnp.float32),
    }
    result = fed_head(new_text_feature, new_image_feature, head_params)
    result = jax.block_until_ready(result)
    ref_result = fed_head_ref(new_text_feature, new_image_feature, head_params)
    assert result.shape == (B, 2)
    assert jnp.allclose(result, ref_result, atol=2e-2, rtol=2e-2)

    print("KERNEL_OK")
</pallas_src>

<mosaic_0001>
module attributes {stable_mosaic.version = 11 : i64} {
  func.func @multimodal_encoder_kernel(%arg0: i32, %arg1: i32, %arg2: memref<1x8x32xf32, #tpu.memory_space<vmem>>, %arg3: memref<1x1x1x8xf32, #tpu.memory_space<vmem>>, %arg4: memref<1x32x96xf32, #tpu.memory_space<vmem>>, %arg5: memref<1x1x96xf32, #tpu.memory_space<vmem>>, %arg6: memref<1x32x32xf32, #tpu.memory_space<vmem>>, %arg7: memref<1x1x32xf32, #tpu.memory_space<vmem>>, %arg8: memref<1x32x128xf32, #tpu.memory_space<vmem>>, %arg9: memref<1x1x128xf32, #tpu.memory_space<vmem>>, %arg10: memref<1x128x32xf32, #tpu.memory_space<vmem>>, %arg11: memref<1x1x32xf32, #tpu.memory_space<vmem>>, %arg12: memref<1x4x32xf32, #tpu.memory_space<vmem>>, %arg13: memref<1x1x8x32xf32, #tpu.memory_space<vmem>>, %arg14: memref<1x1x2x8x8xf32, #tpu.memory_space<vmem>>, %arg15: memref<8x32xf32, #tpu.memory_space<vmem>>) attributes {dimension_semantics = [#tpu.dimension_semantics<parallel>, #tpu.dimension_semantics<arbitrary>], iteration_bounds = array<i64: 2, 2>, scalar_prefetch = 0 : i64, scratch_operands = 1 : i64, tpu.core_type = #tpu.core_type<tc>, window_params = [{transform_indices = @transform_0, window_bounds = array<i64: 1, 8, 32>}, {transform_indices = @transform_1, window_bounds = array<i64: 1, 1, 1, 8>}, {transform_indices = @transform_2, window_bounds = array<i64: 1, 32, 96>}, {transform_indices = @transform_3, window_bounds = array<i64: 1, 1, 96>}, {transform_indices = @transform_4, window_bounds = array<i64: 1, 32, 32>}, {transform_indices = @transform_5, window_bounds = array<i64: 1, 1, 32>}, {transform_indices = @transform_6, window_bounds = array<i64: 1, 32, 128>}, {transform_indices = @transform_7, window_bounds = array<i64: 1, 1, 128>}, {transform_indices = @transform_8, window_bounds = array<i64: 1, 128, 32>}, {transform_indices = @transform_9, window_bounds = array<i64: 1, 1, 32>}, {transform_indices = @transform_10, window_bounds = array<i64: 1, 4, 32>}, {transform_indices = @transform_11, window_bounds = array<i64: 1, 1, 8, 32>}, {transform_indices = @transform_12, window_bounds = array<i64: 1, 1, 2, 8, 8>}]} {
    %c0_i32 = arith.constant 0 : i32
    %0 = arith.cmpi eq, %arg1, %c0_i32 : i32
    %1 = arith.extui %0 : i1 to i32
    %c0_i32_0 = arith.constant 0 : i32
    %2 = arith.cmpi ne, %1, %c0_i32_0 : i32
    scf.if %2 {
      %c0_75 = arith.constant 0 : index
      %c0_76 = arith.constant 0 : index
      %c0_77 = arith.constant 0 : index
      %144 = vector.load %arg2[%c0_75, %c0_76, %c0_77] : memref<1x8x32xf32, #tpu.memory_space<vmem>>, vector<1x8x32xf32>
      %145 = vector.shape_cast %144 : vector<1x8x32xf32> to vector<8x32xf32>
      %c0_78 = arith.constant 0 : index
      %c0_79 = arith.constant 0 : index
      %146 = vector.load %arg15[%c0_78, %c0_79] : memref<8x32xf32, #tpu.memory_space<vmem>>, vector<8x32xf32>
      tpu.vector_store %arg15[%c0_78, %c0_79], %145 {strides = array<i32>} : memref<8x32xf32, #tpu.memory_space<vmem>>, vector<8x32xf32>,
    } else {
    }
    %c0 = arith.constant 0 : index
    %c0_1 = arith.constant 0 : index
    %3 = vector.load %arg15[%c0, %c0_1] : memref<8x32xf32, #tpu.memory_space<vmem>>, vector<8x32xf32>
    %c0_2 = arith.constant 0 : index
    %c0_3 = arith.constant 0 : index
    %c0_4 = arith.constant 0 : index
    %4 = vector.load %arg4[%c0_2, %c0_3, %c0_4] : memref<1x32x96xf32, #tpu.memory_space<vmem>>, vector<1x32x96xf32>
    %5 = vector.shape_cast %4 : vector<1x32x96xf32> to vector<32x96xf32>
    %cst = arith.constant dense<0.000000e+00> : vector<8x96xf32>
    %6 = tpu.matmul %3, %5, %cst {dimension_numbers = #tpu.dot_dimension_numbers<[1], [0], [0], [1], [0, 0, 1, 1], [], []>} : vector<8x32xf32>, vector<32x96xf32>, vector<8x96xf32> -> vector<8x96xf32>
    %c0_5 = arith.constant 0 : index
    %c0_6 = arith.constant 0 : index
    %c0_7 = arith.constant 0 : index
    %7 = vector.load %arg5[%c0_5, %c0_6, %c0_7] : memref<1x1x96xf32, #tpu.memory_space<vmem>>, vector<1x1x96xf32>
    %8 = vector.shape_cast %7 : vector<1x1x96xf32> to vector<1x96xf32>
    %9 = vector.broadcast %8 : vector<1x96xf32> to vector<8x96xf32>
    %10 = arith.addf %6, %9 : vector<8x96xf32>
    %c0_8 = arith.constant 0 : index
    %c0_9 = arith.constant 0 : index
    %c0_10 = arith.constant 0 : index
    %c0_11 = arith.constant 0 : index
    %11 = vector.load %arg3[%c0_8, %c0_9, %c0_10, %c0_11] : memref<1x1x1x8xf32, #tpu.memory_space<vmem>>, vector<1x1x1x8xf32>
    %12 = vector.shape_cast %11 : vector<1x1x1x8xf32> to vector<1x8xf32>
    %13 = vector.extract_strided_slice %10 {offsets = [0, 0], sizes = [8, 16], strides = [1, 1]} : vector<8x96xf32> to vector<8x16xf32>
    %cst_12 = arith.constant 2.500000e-01 : f32
    %14 = vector.broadcast %cst_12 : f32 to vector<8x16xf32>
    %15 = arith.mulf %13, %14 : vector<8x16xf32>
    %16 = vector.extract_strided_slice %10 {offsets = [0, 32], sizes = [8, 16], strides = [1, 1]} : vector<8x96xf32> to vector<8x16xf32>
    %17 = vector.extract_strided_slice %10 {offsets = [0, 64], sizes = [8, 16], strides = [1, 1]} : vector<8x96xf32> to vector<8x16xf32>
    %cst_13 = arith.constant dense<0.000000e+00> : vector<8x8xf32>
    %18 = tpu.matmul %15, %16, %cst_13 {dimension_numbers = #tpu.dot_dimension_numbers<[1], [1], [0], [0], [0, 0, 1, 0], [], []>} : vector<8x16xf32>, vector<8x16xf32>, vector<8x8xf32> -> vector<8x8xf32>
    %19 = vector.broadcast %12 : vector<1x8xf32> to vector<8x8xf32>
    %20 = arith.addf %18, %19 : vector<8x8xf32>
    %cst_14 = arith.constant dense<0xFF800000> : vector<8xf32>
    %21 = vector.multi_reduction <maximumf>, %20, %cst_14 [1] : vector<8x8xf32> to vector<8xf32>
    %22 = vector.shape_cast %21 : vector<8xf32> to vector<8x1xf32>
    %23 = vector.broadcast %22 : vector<8x1xf32> to vector<8x8xf32>
    %24 = arith.subf %20, %23 : vector<8x8xf32>
    %25 = math.exp %24 : vector<8x8xf32>
    %cst_15 = arith.constant dense<0.000000e+00> : vector<8xf32>
    %26 = vector.multi_reduction <add>, %25, %cst_15 [1] : vector<8x8xf32> to vector<8xf32>
    %27 = vector.shape_cast %26 : vector<8xf32> to vector<8x1xf32>
    %28 = tpu.reciprocal %27 {approx = true} : vector<8x1xf32> -> vector<8x1xf32>
    %29 = vector.broadcast %28 : vector<8x1xf32> to vector<8x8xf32>
    %30 = arith.mulf %25, %29 : vector<8x8xf32>
    %c0_16 = arith.constant 0 : index
    %c0_17 = arith.constant 0 : index
    %c0_18 = arith.constant 0 : index
    %c0_19 = arith.constant 0 : index
    %c0_20 = arith.constant 0 : index
    %31 = vector.load %arg14[%c0_16, %c0_17, %c0_18, %c0_19, %c0_20] : memref<1x1x2x8x8xf32, #tpu.memory_space<vmem>>, vector<1x1x1x8x8xf32>
    %32 = vector.shape_cast %31 : vector<1x1x1x8x8xf32> to vector<8x8xf32>
    %33 = vector.shape_cast %30 : vector<8x8xf32> to vector<1x1x1x8x8xf32>
    tpu.vector_store %arg14[%c0_16, %c0_17, %c0_18, %c0_19, %c0_20], %33 {strides = array<i32>} : memref<1x1x2x8x8xf32, #tpu.memory_space<vmem>>, vector<1x1x1x8x8xf32>,
    %cst_21 = arith.constant dense<0.000000e+00> : vector<8x16xf32>
    %34 = tpu.matmul %30, %17, %cst_21 {dimension_numbers = #tpu.dot_dimension_numbers<[1], [0], [0], [1], [0, 0, 1, 1], [], []>} : vector<8x8xf32>, vector<8x16xf32>, vector<8x16xf32> -> vector<8x16xf32>
    %35 = vector.extract_strided_slice %10 {offsets = [0, 16], sizes = [8, 16], strides = [1, 1]} : vector<8x96xf32> to vector<8x16xf32>
    %cst_22 = arith.constant 2.500000e-01 : f32
    %36 = vector.broadcast %cst_22 : f32 to vector<8x16xf32>
    %37 = arith.mulf %35, %36 : vector<8x16xf32>
    %38 = vector.extract_strided_slice %10 {offsets = [0, 48], sizes = [8, 16], strides = [1, 1]} : vector<8x96xf32> to vector<8x16xf32>
    %39 = vector.extract_strided_slice %10 {offsets = [0, 80], sizes = [8, 16], strides = [1, 1]} : vector<8x96xf32> to vector<8x16xf32>
    %cst_23 = arith.constant dense<0.000000e+00> : vector<8x8xf32>
    %40 = tpu.matmul %37, %38, %cst_23 {dimension_numbers = #tpu.dot_dimension_numbers<[1], [1], [0], [0], [0, 0, 1, 0], [], []>} : vector<8x16xf32>, vector<8x16xf32>, vector<8x8xf32> -> vector<8x8xf32>
    %41 = vector.broadcast %12 : vector<1x8xf32> to vector<8x8xf32>
    %42 = arith.addf %40, %41 : vector<8x8xf32>
    %cst_24 = arith.constant dense<0xFF800000> : vector<8xf32>
    %43 = vector.multi_reduction <maximumf>, %42, %cst_24 [1] : vector<8x8xf32> to vector<8xf32>
    %44 = vector.shape_cast %43 : vector<8xf32> to vector<8x1xf32>
    %45 = vector.broadcast %44 : vector<8x1xf32> to vector<8x8xf32>
    %46 = arith.subf %42, %45 : vector<8x8xf32>
    %47 = math.exp %46 : vector<8x8xf32>
    %cst_25 = arith.constant dense<0.000000e+00> : vector<8xf32>
    %48 = vector.multi_reduction <add>, %47, %cst_25 [1] : vector<8x8xf32> to vector<8xf32>
    %49 = vector.shape_cast %48 : vector<8xf32> to vector<8x1xf32>
    %50 = tpu.reciprocal %49 {approx = true} : vector<8x1xf32> -> vector<8x1xf32>
    %51 = vector.broadcast %50 : vector<8x1xf32> to vector<8x8xf32>
    %52 = arith.mulf %47, %51 : vector<8x8xf32>
    %c0_26 = arith.constant 0 : index
    %c0_27 = arith.constant 0 : index
    %c1 = arith.constant 1 : index
    %c0_28 = arith.constant 0 : index
    %c0_29 = arith.constant 0 : index
    %53 = vector.load %arg14[%c0_26, %c0_27, %c1, %c0_28, %c0_29] : memref<1x1x2x8x8xf32, #tpu.memory_space<vmem>>, vector<1x1x1x8x8xf32>
    %54 = vector.shape_cast %53 : vector<1x1x1x8x8xf32> to vector<8x8xf32>
    %55 = vector.shape_cast %52 : vector<8x8xf32> to vector<1x1x1x8x8xf32>
    tpu.vector_store %arg14[%c0_26, %c0_27, %c1, %c0_28, %c0_29], %55 {strides = array<i32>} : memref<1x1x2x8x8xf32, #tpu.memory_space<vmem>>, vector<1x1x1x8x8xf32>,
    %cst_30 = arith.constant dense<0.000000e+00> : vector<8x16xf32>
    %56 = tpu.matmul %52, %39, %cst_30 {dimension_numbers = #tpu.dot_dimension_numbers<[1], [0], [0], [1], [0, 0, 1, 1], [], []>} : vector<8x8xf32>, vector<8x16xf32>, vector<8x16xf32> -> vector<8x16xf32>
    %57 = tpu.concatenate %34, %56 in 1 : vector<8x16xf32>, vector<8x16xf32> -> vector<8x32xf32>
    %c0_31 = arith.constant 0 : index
    %c0_32 = arith.constant 0 : index
    %c0_33 = arith.constant 0 : index
    %58 = vector.load %arg12[%c0_31, %c0_32, %c0_33] : memref<1x4x32xf32, #tpu.memory_space<vmem>>, vector<1x4x32xf32>
    %59 = vector.shape_cast %58 : vector<1x4x32xf32> to vector<4x32xf32>
    %c0_34 = arith.constant 0 : index
    %c0_35 = arith.constant 0 : index
    %c0_36 = arith.constant 0 : index
    %60 = vector.load %arg6[%c0_34, %c0_35, %c0_36] : memref<1x32x32xf32, #tpu.memory_space<vmem>>, vector<1x32x32xf32>
    %61 = vector.shape_cast %60 : vector<1x32x32xf32> to vector<32x32xf32>
    %cst_37 = arith.constant dense<0.000000e+00> : vector<8x32xf32>
    %62 = tpu.matmul %57, %61, %cst_37 {dimension_numbers = #tpu.dot_dimension_numbers<[1], [0], [0], [1], [0, 0, 1, 1], [], []>} : vector<8x32xf32>, vector<32x32xf32>, vector<8x32xf32> -> vector<8x32xf32>
    %c0_38 = arith.constant 0 : index
    %c0_39 = arith.constant 0 : index
    %c0_40 = arith.constant 0 : index
    %63 = vector.load %arg7[%c0_38, %c0_39, %c0_40] : memref<1x1x32xf32, #tpu.memory_space<vmem>>, vector<1x1x32xf32>
    %64 = vector.shape_cast %63 : vector<1x1x32xf32> to vector<1x32xf32>
    %65 = vector.broadcast %64 : vector<1x32xf32> to vector<8x32xf32>
    %66 = arith.addf %62, %65 : vector<8x32xf32>
    %67 = arith.addf %66, %3 : vector<8x32xf32>
    %68 = vector.extract_strided_slice %59 {offsets = [0, 0], sizes = [1, 32], strides = [1, 1]} : vector<4x32xf32> to vector<1x32xf32>
    %69 = vector.extract_strided_slice %59 {offsets = [1, 0], sizes = [1, 32], strides = [1, 1]} : vector<4x32xf32> to vector<1x32xf32>
    %cst_41 = arith.constant dense<0.000000e+00> : vector<8xf32>
    %70 = vector.multi_reduction <add>, %67, %cst_41 [1] : vector<8x32xf32> to vector<8xf32>
    %71 = vector.shape_cast %70 : vector<8xf32> to vector<8x1xf32>
    %cst_42 = arith.constant 3.200000e+01 : f32
    %72 = vector.broadcast %cst_42 : f32 to vector<8x1xf32>
    %73 = arith.divf %71, %72 : vector<8x1xf32>
    %74 = vector.broadcast %73 : vector<8x1xf32> to vector<8x32xf32>
    %75 = arith.subf %67, %74 : vector<8x32xf32>
    %76 = arith.mulf %75, %75 : vector<8x32xf32>
    %cst_43 = arith.constant dense<0.000000e+00> : vector<8xf32>
    %77 = vector.multi_reduction <add>, %76, %cst_43 [1] : vector<8x32xf32> to vector<8xf32>
    %78 = vector.shape_cast %77 : vector<8xf32> to vector<8x1xf32>
    %cst_44 = arith.constant 3.200000e+01 : f32
    %79 = vector.broadcast %cst_44 : f32 to vector<8x1xf32>
    %80 = arith.divf %78, %79 : vector<8x1xf32>
    %cst_45 = arith.constant 9.99999996E-13 : f32
    %81 = vector.broadcast %cst_45 : f32 to vector<8x1xf32>
    %82 = arith.addf %80, %81 : vector<8x1xf32>
    %83 = math.rsqrt %82 : vector<8x1xf32>
    %84 = vector.broadcast %83 : vector<8x1xf32> to vector<8x32xf32>
    %85 = arith.mulf %75, %84 : vector<8x32xf32>
    %86 = vector.broadcast %68 : vector<1x32xf32> to vector<8x32xf32>
    %87 = arith.mulf %85, %86 : vector<8x32xf32>
    %88 = vector.broadcast %69 : vector<1x32xf32> to vector<8x32xf32>
    %89 = arith.addf %87, %88 : vector<8x32xf32>
    %c0_46 = arith.constant 0 : index
    %c0_47 = arith.constant 0 : index
    %c0_48 = arith.constant 0 : index
    %90 = vector.load %arg8[%c0_46, %c0_47, %c0_48] : memref<1x32x128xf32, #tpu.memory_space<vmem>>, vector<1x32x128xf32>
    %91 = vector.shape_cast %90 : vector<1x32x128xf32> to vector<32x128xf32>
    %cst_49 = arith.constant dense<0.000000e+00> : vector<8x128xf32>
    %92 = tpu.matmul %89, %91, %cst_49 {dimension_numbers = #tpu.dot_dimension_numbers<[1], [0], [0], [1], [0, 0, 1, 1], [], []>} : vector<8x32xf32>, vector<32x128xf32>, vector<8x128xf32> -> vector<8x128xf32>
    %c0_50 = arith.constant 0 : index
    %c0_51 = arith.constant 0 : index
    %c0_52 = arith.constant 0 : index
    %93 = vector.load %arg9[%c0_50, %c0_51, %c0_52] : memref<1x1x128xf32, #tpu.memory_space<vmem>>, vector<1x1x128xf32>
    %94 = vector.shape_cast %93 : vector<1x1x128xf32> to vector<1x128xf32>
    %95 = vector.broadcast %94 : vector<1x128xf32> to vector<8x128xf32>
    %96 = arith.addf %92, %95 : vector<8x128xf32>
    %97 = arith.mulf %96, %96 : vector<8x128xf32>
    %98 = arith.mulf %96, %97 : vector<8x128xf32>
    %cst_53 = arith.constant 4.471500e-02 : f32
    %99 = vector.broadcast %cst_53 : f32 to vector<8x128xf32>
    %100 = arith.mulf %99, %98 : vector<8x128xf32>
    %101 = arith.addf %96, %100 : vector<8x128xf32>
    %cst_54 = arith.constant 0.797884583 : f32
    %102 = vector.broadcast %cst_54 : f32 to vector<8x128xf32>
    %103 = arith.mulf %102, %101 : vector<8x128xf32>
    %104 = math.tanh %103 : vector<8x128xf32>
    %cst_55 = arith.constant 1.000000e+00 : f32
    %105 = vector.broadcast %cst_55 : f32 to vector<8x128xf32>
    %106 = arith.addf %105, %104 : vector<8x128xf32>
    %cst_56 = arith.constant 5.000000e-01 : f32
    %107 = vector.broadcast %cst_56 : f32 to vector<8x128xf32>
    %108 = arith.mulf %107, %106 : vector<8x128xf32>
    %109 = arith.mulf %96, %108 : vector<8x128xf32>
    %c0_57 = arith.constant 0 : index
    %c0_58 = arith.constant 0 : index
    %c0_59 = arith.constant 0 : index
    %110 = vector.load %arg10[%c0_57, %c0_58, %c0_59] : memref<1x128x32xf32, #tpu.memory_space<vmem>>, vector<1x128x32xf32>
    %111 = vector.shape_cast %110 : vector<1x128x32xf32> to vector<128x32xf32>
    %cst_60 = arith.constant dense<0.000000e+00> : vector<8x32xf32>
    %112 = tpu.matmul %109, %111, %cst_60 {dimension_numbers = #tpu.dot_dimension_numbers<[1], [0], [0], [1], [0, 0, 1, 1], [], []>} : vector<8x128xf32>, vector<128x32xf32>, vector<8x32xf32> -> vector<8x32xf32>
    %c0_61 = arith.constant 0 : index
    %c0_62 = arith.constant 0 : index
    %c0_63 = arith.constant 0 : index
    %113 = vector.load %arg11[%c0_61, %c0_62, %c0_63] : memref<1x1x32xf32, #tpu.memory_space<vmem>>, vector<1x1x32xf32>
    %114 = vector.shape_cast %113 : vector<1x1x32xf32> to vector<1x32xf32>
    %115 = vector.broadcast %114 : vector<1x32xf32> to vector<8x32xf32>
    %116 = arith.addf %112, %115 : vector<8x32xf32>
    %117 = arith.addf %116, %89 : vector<8x32xf32>
    %118 = vector.extract_strided_slice %59 {offsets = [2, 0], sizes = [1, 32], strides = [1, 1]} : vector<4x32xf32> to vector<1x32xf32>
    %119 = vector.extract_strided_slice %59 {offsets = [3, 0], sizes = [1, 32], strides = [1, 1]} : vector<4x32xf32> to vector<1x32xf32>
    %cst_64 = arith.constant dense<0.000000e+00> : vector<8xf32>
    %120 = vector.multi_reduction <add>, %117, %cst_64 [1] : vector<8x32xf32> to vector<8xf32>
    %121 = vector.shape_cast %120 : vector<8xf32> to vector<8x1xf32>
    %cst_65 = arith.constant 3.200000e+01 : f32
    %122 = vector.broadcast %cst_65 : f32 to vector<8x1xf32>
    %123 = arith.divf %121, %122 : vector<8x1xf32>
    %124 = vector.broadcast %123 : vector<8x1xf32> to vector<8x32xf32>
    %125 = arith.subf %117, %124 : vector<8x32xf32>
    %126 = arith.mulf %125, %125 : vector<8x32xf32>
    %cst_66 = arith.constant dense<0.000000e+00> : vector<8xf32>
    %127 = vector.multi_reduction <add>, %126, %cst_66 [1] : vector<8x32xf32> to vector<8xf32>
    %128 = vector.shape_cast %127 : vector<8xf32> to vector<8x1xf32>
    %cst_67 = arith.constant 3.200000e+01 : f32
    %129 = vector.broadcast %cst_67 : f32 to vector<8x1xf32>
    %130 = arith.divf %128, %129 : vector<8x1xf32>
    %cst_68 = arith.constant 9.99999996E-13 : f32
    %131 = vector.broadcast %cst_68 : f32 to vector<8x1xf32>
    %132 = arith.addf %130, %131 : vector<8x1xf32>
    %133 = math.rsqrt %132 : vector<8x1xf32>
    %134 = vector.broadcast %133 : vector<8x1xf32> to vector<8x32xf32>
    %135 = arith.mulf %125, %134 : vector<8x32xf32>
    %136 = vector.broadcast %118 : vector<1x32xf32> to vector<8x32xf32>
    %137 = arith.mulf %135, %136 : vector<8x32xf32>
    %138 = vector.broadcast %119 : vector<1x32xf32> to vector<8x32xf32>
    %139 = arith.addf %137, %138 : vector<8x32xf32>
    %c0_69 = arith.constant 0 : index
    %c0_70 = arith.constant 0 : index
    %140 = vector.load %arg15[%c0_69, %c0_70] : memref<8x32xf32, #tpu.memory_space<vmem>>, vector<8x32xf32>
    tpu.vector_store %arg15[%c0_69, %c0_70], %139 {strides = array<i32>} : memref<8x32xf32, #tpu.memory_space<vmem>>, vector<8x32xf32>,
    %c0_71 = arith.constant 0 : index
    %c0_72 = arith.constant 0 : index
    %c0_73 = arith.constant 0 : index
    %c0_74 = arith.constant 0 : index
    %141 = vector.load %arg13[%c0_71, %c0_72, %c0_73, %c0_74] : memref<1x1x8x32xf32, #tpu.memory_space<vmem>>, vector<1x1x8x32xf32>
    %142 = vector.shape_cast %141 : vector<1x1x8x32xf32> to vector<8x32xf32>
    %143 = vector.shape_cast %139 : vector<8x32xf32> to vector<1x1x8x32xf32>
    tpu.vector_store %arg13[%c0_71, %c0_72, %c0_73, %c0_74], %143 {strides = array<i32>} : memref<1x1x8x32xf32, #tpu.memory_space<vmem>>, vector<1x1x8x32xf32>,
    return
  }
  func.func @transform_0(%arg0: i32, %arg1: i32) -> (i32, i32, i32) {
    %c0_i32 = arith.constant 0 : i32
    %c0_i32_0 = arith.constant 0 : i32
    %c0_i32_1 = arith.constant 0 : i32
    return %arg0, %c0_i32, %c0_i32_0 : i32, i32, i32
  }
  func.func @transform_1(%arg0: i32, %arg1: i32) -> (i32, i32, i32, i32) {
    %c0_i32 = arith.constant 0 : i32
    %c0_i32_0 = arith.constant 0 : i32
    %c0_i32_1 = arith.constant 0 : i32
    %c0_i32_2 = arith.constant 0 : i32
    return %arg0, %c0_i32, %c0_i32_0, %c0_i32_1 : i32, i32, i32, i32
  }
  func.func @transform_2(%arg0: i32, %arg1: i32) -> (i32, i32, i32) {
    %c0_i32 = arith.constant 0 : i32
    %c0_i32_0 = arith.constant 0 : i32
    %c0_i32_1 = arith.constant 0 : i32
    return %arg1, %c0_i32, %c0_i32_0 : i32, i32, i32
  }
  func.func @transform_3(%arg0: i32, %arg1: i32) -> (i32, i32, i32) {
    %c0_i32 = arith.constant 0 : i32
    %c0_i32_0 = arith.constant 0 : i32
    %c0_i32_1 = arith.constant 0 : i32
    return %arg1, %c0_i32, %c0_i32_0 : i32, i32, i32
  }
  func.func @transform_4(%arg0: i32, %arg1: i32) -> (i32, i32, i32) {
    %c0_i32 = arith.constant 0 : i32
    %c0_i32_0 = arith.constant 0 : i32
    %c0_i32_1 = arith.constant 0 : i32
    return %arg1, %c0_i32, %c0_i32_0 : i32, i32, i32
  }
  func.func @transform_5(%arg0: i32, %arg1: i32) -> (i32, i32, i32) {
    %c0_i32 = arith.constant 0 : i32
    %c0_i32_0 = arith.constant 0 : i32
    %c0_i32_1 = arith.constant 0 : i32
    return %arg1, %c0_i32, %c0_i32_0 : i32, i32, i32
  }
  func.func @transform_6(%arg0: i32, %arg1: i32) -> (i32, i32, i32) {
    %c0_i32 = arith.constant 0 : i32
    %c0_i32_0 = arith.constant 0 : i32
    %c0_i32_1 = arith.constant 0 : i32
    return %arg1, %c0_i32, %c0_i32_0 : i32, i32, i32
  }
  func.func @transform_7(%arg0: i32, %arg1: i32) -> (i32, i32, i32) {
    %c0_i32 = arith.constant 0 : i32
    %c0_i32_0 = arith.constant 0 : i32
    %c0_i32_1 = arith.constant 0 : i32
    return %arg1, %c0_i32, %c0_i32_0 : i32, i32, i32
  }
  func.func @transform_8(%arg0: i32, %arg1: i32) -> (i32, i32, i32) {
    %c0_i32 = arith.constant 0 : i32
    %c0_i32_0 = arith.constant 0 : i32
    %c0_i32_1 = arith.constant 0 : i32
    return %arg1, %c0_i32, %c0_i32_0 : i32, i32, i32
  }
  func.func @transform_9(%arg0: i32, %arg1: i32) -> (i32, i32, i32) {
    %c0_i32 = arith.constant 0 : i32
    %c0_i32_0 = arith.constant 0 : i32
    %c0_i32_1 = arith.constant 0 : i32
    return %arg1, %c0_i32, %c0_i32_0 : i32, i32, i32
  }
  func.func @transform_10(%arg0: i32, %arg1: i32) -> (i32, i32, i32) {
    %c0_i32 = arith.constant 0 : i32
    %c0_i32_0 = arith.constant 0 : i32
    %c0_i32_1 = arith.constant 0 : i32
    return %arg1, %c0_i32, %c0_i32_0 : i32, i32, i32
  }
  func.func @transform_11(%arg0: i32, %arg1: i32) -> (i32, i32, i32, i32) {
    %c0_i32 = arith.constant 0 : i32
    %c0_i32_0 = arith.constant 0 : i32
    %c0_i32_1 = arith.constant 0 : i32
    return %arg1, %arg0, %c0_i32, %c0_i32_0 : i32, i32, i32, i32
  }
  func.func @transform_12(%arg0: i32, %arg1: i32) -> (i32, i32, i32, i32, i32) {
    %c0_i32 = arith.constant 0 : i32
    %c0_i32_0 = arith.constant 0 : i32
    %c0_i32_1 = arith.constant 0 : i32
    %c0_i32_2 = arith.constant 0 : i32
    return %arg1, %arg0, %c0_i32, %c0_i32_0, %c0_i32_1 : i32, i32, i32, i32, i32
  }
}

</mosaic_0001>

<bundles_post_ra>
// kernel: tpu_custom_call.1
= control target key start
LH: loop header
LB: loop body
LE: loop exit
PB: predicated region body
PF: predicated region fallthrough
CT: control target
= control target key end

     0   :  { %s2498_s0 = inlined_call_operand.vmem [shape: f32[2,8,32], index: 0, kind: input, shape index: {}]   ;;  %s2499_s1 = inlined_call_operand.vmem [shape: f32[2,1,1,8], index: 1, kind: input, shape index: {}]   ;;  %s2500_s2 = inlined_call_operand.vmem [shape: f32[2,32,96], index: 2, kind: input, shape index: {}]   ;;  %s2501_s3 = inlined_call_operand.vmem [shape: f32[2,1,96], index: 3, kind: input, shape index: {}]   ;;  %s2502_s4 = inlined_call_operand.vmem [shape: f32[2,32,32], index: 4, kind: input, shape index: {}]   ;;  %s2503_s5 = inlined_call_operand.vmem [shape: f32[2,1,32], index: 5, kind: input, shape index: {}]   ;;  %s2504_s6 = inlined_call_operand.vmem [shape: f32[2,32,128], index: 6, kind: input, shape index: {}]   ;;  %s2505_s7 = inlined_call_operand.vmem [shape: f32[2,1,128], index: 7, kind: input, shape index: {}]   ;;  %s2506_s8 = inlined_call_operand.vmem [shape: f32[2,128,32], index: 8, kind: input, shape index: {}]   ;;  %s2507_s9 = inlined_call_operand.vmem [shape: f32[2,1,32], index: 9, kind: input, shape index: {}]   ;;  %s2508_s10 = inlined_call_operand.vmem [shape: f32[2,4,32], index: 10, kind: input, shape index: {}]   ;;  %s2509_s11 = inlined_call_operand.hbm [shape: f32[2,2,8,32], index: 11, kind: output, shape index: {0}]   ;;  %s2510_s12 = inlined_call_operand.hbm [shape: f32[2,2,2,8,8], index: 12, kind: output, shape index: {1}]  }
   0x1   :  { %2529 = sst [smem:[#allocation22_spill]] %s2498_s0 }
   0x2   :  { %2530 = sst [smem:[#allocation23_spill]] %s2499_s1 }
   0x3   :  { %2531 = sst [smem:[#allocation24_spill]] %s2500_s2 }
   0x4   :  { %2532 = sst [smem:[#allocation25_spill]] %s2502_s4 }
   0x5   :  { %2533 = sst [smem:[#allocation26_spill]] %s2503_s5 }
   0x6   :  { %2534 = sst [smem:[#allocation27_spill]] %s2509_s11 }
   0x7   :  { %2535 = sst [smem:[#allocation28_spill]] %s2510_s12 }
   0x8   :  { %18 = vsyncpa [#allocation4], 0 }
   0x9   :  { %20 = vsyncpa [#allocation4 + $0x1], 0 }
   0xa   :  { %21 = vsyncpa [#allocation6], 0 }
   0xb   :  { %23 = vsyncpa [#allocation6 + $0x1], 0  ;;  %s2140_s21 = smov 0   ;;  %s2142_s22 = smov 0  }
   0xc   :  { %s2144_s23 = smov 0   ;;  %s2146_s24 = smov 0  }
   0xd   :  { %s2148_s25 = smov 0   ;;  %s2150_s26 = smov 0  }
   0xe   :  { %s2152_s27 = smov 0   ;;  %s2154_s28 = smov 0  }
   0xf LB: > { %2536 = sst [smem:[#allocation9_spill]] %s2032_s21  ;;  %s1617_s29 = sadd.s32 4294967295, %s2060_s28   ;;  %s2060_s28 = sphi %s2154_s28, %s29_s28   ;;  %s2056_s27 = sphi %s2152_s27, %s2576_s27   ;;  %s2052_s26 = sphi %s2150_s26, %s2575_s26   ;;  %s2048_s25 = sphi %s2148_s25, %s2574_s25   ;;  %s2044_s24 = sphi %s2146_s24, %s2573_s24   ;;  %s2040_s23 = sphi %s2144_s23, %s2572_s23   ;;  %s2036_s22 = sphi %s2142_s22, %s2571_s22   ;;  %s2032_s21 = sphi %s2140_s21, %s2570_s21  }
  0x10   : > { %2537 = sst [smem:[#allocation10_spill]] %s2036_s22  ;;  %s1618_s30 = sadd.s32 4294967294, %s2060_s28  }
  0x11   : > { %2538 = sst [smem:[#allocation11_spill]] %s2040_s23  ;;  %s38_s13 = sadd.s32 1, %s2052_s26 }
  0x12   : > { %2539 = sst [smem:[#allocation12_spill]] %s2048_s25  ;;  %p39_p0 = scmp.ge.s32.totalorder %s38_s13, 2 }
  0x13   : > { %2540 = sst [smem:[#allocation13_spill]] %s2052_s26  ;;  %s41_s14 = sadd.s32 1, %s2056_s27 }
  0x14   : > { %2541 = sst [smem:[#allocation14_spill]] %s2056_s27  ;;  %p346_p1 = scmp.ne.s32.totalorder %s2040_s23, %s2036_s22 }
  0x15   : > { %2542 = sst [smem:[#allocation15_spill]] %s2060_s28  ;;  %p347_p2 = scmp.eq.s32.totalorder %s1617_s29, 3 }
  0x16   : > { %s2578_s13 = smov (%p39_p0, %s38_s13), 0  ;;  %s2580_s14 = smov (!%p39_p0, %s41_s14), %s2056_s27 }
  0x17   : > { %2543 = sst [smem:[#allocation16_spill]] %s2578_s13  ;;  %s331_s15 = ssub.s32 %s2052_s26, %s2578_s13 }
  0x18   : > { %p2191_p3 = por %p347_p2, %p346_p1  ;;  %p43_p4 = scmp.ge.s32.totalorder %s2580_s14, 2 }
  0x19   : > { %p352_p5 = scmp.ne.s32.totalorder %s2036_s22, %s2032_s21  ;;  %p353_p6 = scmp.eq.s32.totalorder %s1618_s30, 3 }
  0x1a   : > { %s2544_s16 = scalar_select %p2191_p3, 1, 0 }
  0x1b   : > { %p1621_p7 = scmp.ge.s32.totalorder %s2060_s28, 1  ;;  %s2582_s14 = smov (%p43_p4, %s2580_s14), 0 }
  0x1c   : > { %2545 = sst [smem:[#allocation17_spill]] %s2544_s16  ;;  %p2200_p8 = por %p353_p6, %p352_p5 }
  0x1d   : > { %2546 = sst [smem:[#allocation18_spill]] %s2582_s14  ;;  %p475_p9 = scmp.lt.s32.totalorder %s2060_s28, 5 }
  0x1e   : > { %s2547_s17 = scalar_select %p2200_p8, 1, 0 }
  0x1f   : > { %s332_s18 = ssub.s32 %s2056_s27, %s2582_s14  ;;  %s336_s19 = sadd.s32 1, %s2040_s23 }
  0x20   : > { %2548 = sst [smem:[#allocation19_spill]] %s2547_s17  ;;  %s333_s20 = sor.u32 %s332_s18, %s331_s15 }
  0x21   : > { %p476_p10 = pnand %p1621_p7, %p475_p9  ;;  %p334_p11 = scmp.eq.s32.totalorder %s333_s20, 0 }
  0x23   : > { %s2209_s29 = scalar_select %p334_p11, %s2040_s23, %s336_s19  }
  0x24   : > { %479 = sbr.rel (%p476_p10) target bundleno = 2579 (0xa13), region = 64 }
  0x25   : > { %2549 = sst [smem:[#allocation20_spill]] %s2209_s29 }
  0x2b   : > { %s2212_s30 = sand.u32 1, %s2036_s22   ;;  %p560_p12 = scmp.lt.s32.totalorder %s2048_s25, 1 }
  0x2c   : > { %2550 = sst [smem:[#allocation21_spill]] %s2212_s30  ;;  %s1622_s13 = sshll.u32 %s2212_s30, 3 }
  0x2d   : > { %s1623_s26 = sshll.u32 %s2212_s30, 4  ;;  %p567_p13 = scmp.lt.s32.totalorder %s2044_s24, 1 }
  0x2e   : > { %s2218_s14 = scalar_select %p560_p12, %s2048_s25, 1 }
  0x2f   : > { %s2552_s0 = sld [smem:[#allocation22_spill]]  ;;  %s2553_s2 = sld [smem:[#allocation24_spill]] }
  0x30   : > { %s1624_s15 = sshll.u32 %s2218_s14, 3  ;;  %s2554_s4 = sld [smem:[#allocation25_spill]] }
  0x31   : > { %s2230_s22 = scalar_select %p567_p13, %s2044_s24, 1 }
  0x32   : > { %s2276_s30 = scalar_lea.vmem [#allocation5], %s1623_s26  ;;  %p1634_p0 = scmp.ne.s32.totalorder %s2044_s24, 0 }
  0x33   : > { %s1659_s17 = sshll.u32 %s2230_s22, 5  ;;  %s590_s11 = scalar_lea.vmem %s2505_s7, %s2230_s22  ;;  %vm608_vm0 = vcmask (!%p1634_p0), 261120  }
  0x34   : > { %s2252_s1 = scalar_lea.vmem %s2504_s6, %s1659_s17  ;;  %s1662_s18 = sshll.u32 %s2230_s22, 7 }
  0x35   : > { %s563_s23 = scalar_lea.vmem %s2552_s0, %s1624_s15  ;;  %s571_s20 = scalar_lea.vmem %s2553_s2, %s1659_s17 }
  0x36   : > { %s2243_s15 = scalar_lea.vmem %s2554_s4, %s1659_s17  ;;  %s2262_s27 = scalar_lea.vmem %s2506_s8, %s1662_s18  ;;  %v607_v0 = vld [vmem:[%s563_s23] sm:$0xff] (!%p1634_p0) }
  0x37   : > { %s598_s0 = scalar_lea.vmem %s2507_s9, %s2230_s22  ;;  %s1633_s12 = sshll.u32 %s2230_s22, 2  ;;  %609 = vst.msk [vmem:[#allocation2] sm:$0xff] (!%p1634_p0), %vm608_vm0, %v607_v0 }
  0x38   : > { %s2272_s25 = scalar_lea.vmem %s2508_s10, %s1633_s12  ;;  %s2274_s17 = scalar_lea.vmem [#allocation3], %s1622_s13 }
  0x39   : > { %606 = sbr.rel (%p1634_p0) target bundleno = 64 (0x40), region = 68 }
  0x40 PF: > { %v611_v1 = vld [vmem:[%s571_s20] sm:$0xff]  ;;  %v612_v2 = vld [vmem:[%s571_s20 + $0x8] sm:$0xff]  ;;  %v613_v3 = vld [vmem:[%s571_s20 + $0x10] sm:$0xff]  ;;  %v2062_v4 = vmov 0.0|0.0   ;;  %vm2063_vm1 = vmmov 0   ;;  %v2064_v7 = vmov 0.0   ;;  %s2556_s5 = scalar_lea.vmem %s2501_s3, %s2230_s22 }
  0x41   : > { %1791 = vmatprep.subr.bf16.mxu1 %v2062_v4  ;;  %v1792_v5 = vpack.c.bf16 %v612_v2, %v611_v1  ;;  %v614_v6 = vld [vmem:[%s571_s20 + $0x18] sm:$0xff]  ;;  %1711 = vmatprep.mubr.msk.f32.mxu1 %vm2063_vm1, %v2064_v7  ;;  %v2286_v9 = vld [vmem:[#allocation2] sm:$0xff]  ;;  %vm622_vm2 = vcmask 261120   ;;  %s2065_s23 = smov 96   ;;  %s2066_s26 = smov 112   ;;  %vm707_vm3 = vcmask 130048  }
  0x42   : > { %1724 = vmatprep.subr.mxu0 %v2064_v7  ;;  %1726 = vmatprep.mubr.msk.f32.mxu0 %vm2063_vm1, %v2064_v7  ;;  %v1795_v8 = vpack.c.bf16 %v614_v6, %v613_v3  ;;  %v1635_v10 = vld [vmem:[%s2556_s5] ss:$0 sm:$0xff]  ;;  %s2067_s13 = smov 80   ;;  %s2557_s21 = sld [smem:[#allocation23_spill]]  ;;  %vm783_vm4 = vcmask 64512   ;;  %v1046_v46 = vld [vmem:[%s2243_s15 + $0x8] sm:$0xff] }
  0x43   : > { %1793 = vmatpush3.bf16.msra.mxu1 %v1792_v5  ;;  %s2069_s18 = smov 64   ;;  %v1045_v45 = vld [vmem:[%s2243_s15] sm:$0xff]  ;;  %v1047_v47 = vld [vmem:[%s2243_s15 + $0x10] sm:$0xff]  ;;  %v1048_v49 = vld [vmem:[%s2243_s15 + $0x18] sm:$0xff]  ;;  %s2070_s19 = smov 16  }
  0x44   : > { %1794 = vmatprep.subr.bf16.mxu1 %v2062_v4  ;;  %v1798_v48 = vpack.c.bf16 %v1046_v46, %v1045_v45  ;;  %v1801_v50 = vpack.c.bf16 %v1048_v49, %v1047_v47  ;;  %s2559_s12 = sld [smem:[#allocation26_spill]]  ;;  %v1154_v5 = vld [vmem:[%s2252_s1] sm:$0xff]  ;;  %v1155_v6 = vld [vmem:[%s2252_s1 + $0x8] sm:$0xff]  ;;  %v1261_v46 = vld [vmem:[%s2262_s27 + $0x70] sm:$0xff]  ;;  %s2071_s29 = smov [#allocation5]  }
  0x45   : > { %v1262_v47 = vld [vmem:[%s2262_s27 + $0x78] sm:$0xff]  ;;  %v1647_v49 = vld [vmem:[%s590_s11] ss:$0 sm:$0xff]  ;;  %s2562_s11 = sld [smem:[#allocation21_spill]] }
  0x47   : > { %1796 = vmatpush3.bf16.msra.mxu1 %v1795_v8  ;;  %v1156_v8 = vld [vmem:[%s2252_s1 + $0x10] sm:$0xff] }
  0x48   : > { %1714 = vmatprep.subr.mxu1 %v2064_v7  ;;  %s2558_s28 = scalar_lea.vmem %s2557_s21, %s2218_s14  ;;  %s2068_s14 = smov 48  }
  0x49   : > { %v1637_v18 = vld [vmem:[%s2558_s28] ss:$0 sm:$0xff]  ;;  %s2564_s28 = sld [smem:[#allocation28_spill]] }
  0x4a   : > { %1712 = vmatmul.mubr.msk.f32.vlgmr.msra.gmra.mrb[0].mxu1 %vm622_vm2, %v2286_v9  ;;  %s2560_s2 = scalar_lea.vmem %s2559_s12, %s2230_s22  ;;  %s1655_s22 = sshll.u32 %s2044_s24, 2 }
  0x4b   : > { %1716 = vmatprep.mubr.msk.f32.mxu1 %vm2063_vm1, %v2064_v7  ;;  %v1645_v57 = vld [vmem:[%s2560_s2] ss:$0 sm:$0xff]  ;;  %s1938_s12 = sshll.u32 %s2071_s29, 4  ;;  %s1939_s12 = int_to_ptr.vmem [resolvable:$false] %s1938_s12 }
 0x11d   : > { %v692_v11 = vpop.f32.mrb[0].mxu1 }
 0x11e   : > { %v693_v12 = vadd.f32 %v1635_v10, %v692_v11  ;;  %v1713_v13 = vpop.f32.mrb[1].mxu1  ;;  %v1247_v11 = vld [vmem:[%s2262_s27] sm:$0xff] }
 0x120   : > { %705 = vrot.lane.b32.xlu0 %v693_v12, %s2065_s23  ;;  %v697_v14 = vmul.f32 0.25, %v693_v12 }
 0x122   : > { %872 = vrot.lane.b32.xlu1 %v697_v14, %s2066_s26 }
 0x124   : > { %874 = vrot.lane.b32.xlu0 %v693_v12, %s2067_s13  ;;  %s1402_s13 = sshll.u32 %s2276_s30, 4  ;;  %s2400_s13 = int_to_ptr.vmem [resolvable:$true] %s1402_s13 }
 0x125   : > { %s1934_s15 = scalar_lea.vmem %s2400_s13, 256  ;;  %p1941_p5 = scmp.lt.s32.totalorder %s2400_s13, %s1939_s12 }
 0x126   : > { %p1935_p1 = scmp.ne.s32.totalorder %s2400_s13, %s1934_s15 }
 0x128   : > { %p1936_p2 = pnand %p1935_p1, %p2191_p3 }
 0x12a   : > { %p1937_p4 = pneg %p1936_p2 }
 0x192   : > { %v706_v15 = vpop.permute.xlu0 %705 }
 0x193   : > { %1715 = vmatpush3.xpose.msk.msra.mxu1 %vm707_vm3, %v706_v15 }
 0x194   : > { %1719 = vmatprep.subr.mxu1 %v2064_v7  ;;  %v873_v17 = vpop.permute.xlu1 %872 }
 0x196   : > { %v875_v16 = vpop.permute.xlu0 %874  ;;  %1717 = vmatmul.mubr.msk.f32.vlgmr.msra.gmra.mrb[2].mxu1 %vm707_vm3, %v697_v14 }
 0x197   : > { %1725 = vmatpush3.xpose.msk.msra.mxu0 %vm707_vm3, %v875_v16  ;;  %1721 = vmatprep.mubr.msk.f32.mxu1 %vm2063_vm1, %v2064_v7  ;;  %v1144_v16 = vlaneseq }
 0x198   : > { %1809 = vmatprep.subr.bf16.mxu0 %v2062_v4 }
 0x19a   : > { %1727 = vmatmul.mubr.msk.f32.vlgmr.msra.gmra.mrb[0].mxu0 %vm707_vm3, %v873_v17 }
 0x19b   : > { %1788 = vmatprep.mubr.msk.f32.mxu0 %vm2063_vm1, %v2064_v7 }
 0x269   : > { %v779_v19 = vpop.f32.mrb[2].mxu1 }
 0x26a   : > { %v780_v20 = vadd.f32 %v1637_v18, %v779_v19  ;;  %v1718_v21 = vpop.f32.mrb[3].mxu1 }
 0x26c   : > { %v784_v22 = vsel %vm783_vm4, %v780_v20, -inf }
 0x26d   : > { %v946_v23 = vpop.f32.mrb[0].mxu0  ;;  %785 = vmax.xlane.f32.xlu1 %v784_v22 }
 0x26e   : > { %v947_v24 = vadd.f32 %v1637_v18, %v946_v23  ;;  %v1728_v25 = vpop.f32.mrb[1].mxu0  ;;  %v2355_v18 = vshrl.u32 %v1144_v16, 7 }
 0x270   : > { %v950_v26 = vsel %vm783_vm4, %v947_v24, -inf  ;;  %v1146_v19 = vsub.s32 0, %v2355_v18  ;;  %v1151_v21 = vsub.s32 1, %v2355_v18 }
 0x271   : > { %951 = vmax.xlane.f32.xlu0 %v950_v26 }
 0x2fa   : > { %v786_v27 = vpop.xlane.xlu1 %785 }
 0x2fb   : > { %v787_v28 = vsub.f32 %v780_v20, %v786_v27  ;;  %v2359_v20 = vld [vmem:[%s2272_s25] sm:$0xf] }
 0x2fc   : > { %v1147_v22 = vrot.slane %v2359_v20, %v1146_v19  ;;  %v1152_v25 = vrot.slane %v2359_v20, %v1151_v21 }
 0x2fd   : > { %v788_v29 = vmul.f32 1.442695, %v787_v28  ;;  %v1249_v28 = vld [vmem:[%s2262_s27 + $0x10] sm:$0xff] }
 0x2fe   : > { %v952_v30 = vpop.xlane.xlu0 %951 }
 0x2ff   : > { %1920 = vpow2.f32 %v788_v29  ;;  %v953_v31 = vsub.f32 %v947_v24, %v952_v30  ;;  %v1250_v29 = vld [vmem:[%s2262_s27 + $0x18] sm:$0xff] }
 0x300   : > { %v1813_v30 = vpack.c.bf16 %v1250_v29, %v1249_v28 }
 0x301   : > { %v954_v32 = vmul.f32 1.442695, %v953_v31  ;;  %v1251_v31 = vld [vmem:[%s2262_s27 + $0x20] sm:$0xff] }
 0x303   : > { %1922 = vpow2.f32 %v954_v32  ;;  %v1252_v32 = vld [vmem:[%s2262_s27 + $0x28] sm:$0xff] }
 0x309   : > { %v1921_v33 = vpop.eup %1920 }
 0x30a   : > { %v790_v34 = vsel %vm783_vm4, %v1921_v33, 0.0 }
 0x30b   : > { %791 = vadd.xlane.f32.xlu0 %v790_v34  ;;  %v1253_v34 = vld [vmem:[%s2262_s27 + $0x30] sm:$0xff] }
 0x30d   : > { %v1923_v35 = vpop.eup %1922 }
 0x30e   : > { %v956_v36 = vsel %vm783_vm4, %v1923_v35, 0.0 }
 0x30f   : > { %957 = vadd.xlane.f32.xlu1 %v956_v36 }
 0x320   : > { %963 = vrot.lane.b32.xlu1 %v693_v12, %s2068_s14  ;;  %s2565_s14 = smov %s2564_s28 }
 0x321   : > { %796 = vrot.lane.b32.xlu0 %v693_v12, %s2069_s18  ;;  %v1248_v12 = vld [vmem:[%s2262_s27 + $0x8] sm:$0xff] }
 0x322   : > { %v1810_v13 = vpack.c.bf16 %v1248_v12, %v1247_v11 }
 0x324   : > { %1811 = vmatpush3.bf16.msra.mxu0 %v1810_v13 }
 0x325   : > { %1812 = vmatprep.subr.bf16.mxu0 %v2062_v4 }
 0x328   : > { %1814 = vmatpush3.bf16.msra.mxu0 %v1813_v30 }
 0x329   : > { %1815 = vmatprep.subr.bf16.mxu0 %v2062_v4 }
 0x398   : > { %v792_v37 = vpop.xlane.xlu0 %791 }
 0x399   : > { %1924 = vrcp.f32 %v792_v37  ;;  %v1255_v37 = vld [vmem:[%s2262_s27 + $0x40] sm:$0xff] }
 0x39c   : > { %v797_v38 = vpop.permute.xlu0 %796  ;;  %v958_v39 = vpop.xlane.xlu1 %957 }
 0x39d   : > { %1926 = vrcp.f32 %v958_v39  ;;  %1720 = vmatpush3.msra.mxu1 %v797_v38  ;;  %v1256_v38 = vld [vmem:[%s2262_s27 + $0x48] sm:$0xff]  ;;  %v1257_v39 = vld [vmem:[%s2262_s27 + $0x50] sm:$0xff] }
 0x39e   : > { %1729 = vmatprep.subr.mxu1 %v2064_v7 }
 0x3a0   : > { %v964_v42 = vpop.permute.xlu1 %963 }
 0x3a3   : > { %v1925_v40 = vpop.eup %1924 }
 0x3a4   : > { %v794_v41 = vmul.f32 %v1925_v40, %v1921_v33  ;;  %v1816_v33 = vpack.c.bf16 %v1252_v32, %v1251_v31  ;;  %v1822_v40 = vpack.c.bf16 %v1256_v38, %v1255_v37 }
 0x3a6   : > { %795 = vst.msk [vmem:[%s2276_s30] sm:$0xff] %vm783_vm4, %v794_v41  ;;  %1722 = vmatmul.mubr.msk.f32.vlgmr.msra.gmra.mrb[4].mxu1 %vm783_vm4, %v794_v41  ;;  %1817 = vmatpush3.bf16.msra.mxu0 %v1816_v33  ;;  %v1258_v41 = vld [vmem:[%s2262_s27 + $0x58] sm:$0xff] }
 0x3a7   : > { %v1927_v43 = vpop.eup %1926  ;;  %1730 = vmatpush3.msra.mxu1 %v964_v42  ;;  %1731 = vmatprep.mubr.msk.f32.mxu1 %vm2063_vm1, %v2064_v7  ;;  %v1825_v42 = vpack.c.bf16 %v1258_v41, %v1257_v39 }
 0x3a8   : > { %v960_v44 = vmul.f32 %v1927_v43, %v1923_v35  ;;  %1797 = vmatprep.subr.bf16.mxu1 %v2062_v4  ;;  %1818 = vmatprep.subr.bf16.mxu0 %v2062_v4  ;;  %v1254_v35 = vld [vmem:[%s2262_s27 + $0x38] sm:$0xff]  ;;  %v1259_v43 = vld [vmem:[%s2262_s27 + $0x60] sm:$0xff] }
 0x3a9   : > { %v1819_v36 = vpack.c.bf16 %v1254_v35, %v1253_v34 }
 0x3aa   : > { %1643 = vst.msk [vmem:[%s2276_s30 + $0x8] sm:$0xff] %vm783_vm4, %v960_v44  ;;  %1732 = vmatmul.mubr.msk.f32.vlgmr.msra.gmra.mrb[6].mxu1 %vm783_vm4, %v960_v44  ;;  %v1260_v44 = vld [vmem:[%s2262_s27 + $0x68] sm:$0xff]  ;;  %s2561_s27 = sld [smem:[#allocation12_spill]]  ;;  %s1940_s30 = scalar_lea.vmem %s1939_s12, 512 }
 0x3ab   : > { %1742 = vmatprep.mubr.msk.f32.mxu1 %vm2063_vm1, %v2064_v7  ;;  %1799 = vmatpush3.bf16.msra.mxu1 %v1798_v48  ;;  %v1828_v45 = vpack.c.bf16 %v1260_v44, %v1259_v43  ;;  %v1831_v48 = vpack.c.bf16 %v1262_v47, %v1261_v46  ;;  %p1942_p6 = scmp.lt.s32.totalorder %s1940_s30, %s1934_s15 }
 0x3ac   : > { %1800 = vmatprep.subr.bf16.mxu1 %v2062_v4  ;;  %1820 = vmatpush3.bf16.msra.mxu0 %v1819_v36 }
 0x3ad   : > { %1821 = vmatprep.subr.bf16.mxu0 %v2062_v4  ;;  %p1943_p7 = por %p1942_p6, %p1941_p5 }
 0x3af   : > { %1802 = vmatpush3.bf16.msra.mxu1 %v1801_v50  ;;  %p1944_p9 = pnand %p1943_p7, %p1937_p4 }
 0x3b0   : > { %1803 = vmatprep.subr.bf16.mxu1 %v2062_v4  ;;  %1823 = vmatpush3.bf16.msra.mxu0 %v1822_v40  ;;  %s1654_s26 = sshll.u32 %s2561_s27, 1 }
 0x3b1   : > { %1824 = vmatprep.subr.bf16.mxu0 %v2062_v4 }
 0x3b4   : > { %1826 = vmatpush3.bf16.msra.mxu0 %v1825_v42 }
 0x3b5   : > { %1827 = vmatprep.subr.bf16.mxu0 %v2062_v4 }
 0x3b8   : > { %1829 = vmatpush3.bf16.msra.mxu0 %v1828_v45 }
 0x3b9   : > { %1830 = vmatprep.subr.bf16.mxu0 %v2062_v4 }
 0x3bc   : > { %1832 = vmatpush3.bf16.msra.mxu0 %v1831_v48 }
 0x479   : > { %v868_v51 = vpop.f32.mrb[4].mxu1 }
 0x47a   : > { %v1723_v52 = vpop.f32.mrb[5].mxu1 }
 0x47d   : > { %v1035_v53 = vpop.f32.mrb[6].mxu1 }
 0x47e   : > { %1040 = vrot.lane.b32.xlu1 %v1035_v53, %s2070_s19  ;;  %v1733_v54 = vpop.f32.mrb[7].mxu1  ;;  %s1372_s19 = scalar_lea.sflag [#allocation6], %s2562_s11 }
 0x4f0   : > { %v1041_v55 = vpop.permute.xlu1 %1040 }
 0x4f1   : > { %v1043_v56 = vsel %vm707_vm3, %v868_v51, %v1041_v55 }
 0x4f2   : > { %1743 = vmatmul.mubr.msk.f32.vlgmr.msra.gmra.mrb[8].mxu1 %vm622_vm2, %v1043_v56 }
 0x4f3   : > { %1753 = vmatprep.mubr.msk.f32.mxu1 %vm2063_vm1, %v2064_v7  ;;  %v1804_v7 = vpack.c.bf16 %v1155_v6, %v1154_v5 }
 0x4f5   : > { %1805 = vmatpush3.bf16.msra.mxu1 %v1804_v7 }
 0x4f6   : > { %1806 = vmatprep.subr.bf16.mxu1 %v2062_v4 }
 0x5c5   : > { %v1125_v58 = vpop.f32.mrb[8].mxu1 }
 0x5c6   : > { %v1126_v59 = vadd.f32 %v1645_v57, %v1125_v58  ;;  %v1744_v60 = vpop.f32.mrb[9].mxu1 }
 0x5c8   : > { %v1129_v61 = vadd.f32 %v1126_v59, %v2286_v9  ;;  %v1157_v9 = vld [vmem:[%s2252_s1 + $0x18] sm:$0xff] }
 0x5c9   : > { %v1807_v10 = vpack.c.bf16 %v1157_v9, %v1156_v8 }
 0x5ca   : > { %v1130_v62 = vsel %vm622_vm2, %v1129_v61, 0.0 }
 0x5cb   : > { %1131 = vadd.xlane.f32.xlu0 %v1130_v62  ;;  %1808 = vmatpush3.bf16.msra.mxu1 %v1807_v10 }
 0x658   : > { %v1132_v63 = vpop.xlane.xlu0 %1131 }
 0x659   : > { %v1134_v0 = vmul.f32 0.03125, %v1132_v63 }
 0x65b   : > { %v1135_v1 = vsub.f32 %v1129_v61, %v1134_v0  ;;  %v1649_v61 = vld [vmem:[%s598_s0] ss:$0 sm:$0xff]  ;;  %s1399_s0 = sadd.s32 %s1655_s22, %s1654_s26 }
 0x65c   : > { %s1656_s16 = sshll.u32 %s1399_s0, 7 }
 0x65d   : > { %v1136_v2 = vmul.f32 %v1135_v1, %v1135_v1  ;;  %s2405_s18 = scalar_lea.hbm %s2564_s28, %s1656_s16 }
 0x65f   : > { %v1137_v3 = vsel %vm622_vm2, %v1136_v2, 0.0 }
 0x660   : > { %1138 = vadd.xlane.f32.xlu1 %v1137_v3 }
 0x6ed   : > { %v1139_v14 = vpop.xlane.xlu1 %1138 }
 0x6ee   : > { %v1140_v15 = vmul.f32 0.03125, %v1139_v14 }
 0x6f0   : > { %v1141_v17 = vadd.f32 1e-12, %v1140_v15 }
 0x6f2   : > { %1928 = vrsqrt.f32 %v1141_v17 }
 0x6fc   : > { %v1929_v23 = vpop.eup %1928 }
 0x6fd   : > { %v1143_v24 = vmul.f32 %v1929_v23, %v1135_v1 }
 0x6ff   : > { %v1148_v26 = vmul.f32 %v1147_v22, %v1143_v24 }
 0x701   : > { %v1153_v27 = vadd.f32 %v1152_v25, %v1148_v26 }
 0x703   : > { %1754 = vmatmul.mubr.msk.f32.vlgmr.msra.gmra.mrb[10].mxu1 %vm622_vm2, %v1153_v27 }
 0x7d6   : > { %v1234_v50 = vpop.f32.mrb[10].mxu1 }
 0x7d7   : > { %v1235_v51 = vadd.f32 %v1647_v49, %v1234_v50  ;;  %v1755_v52 = vpop.f32.mrb[11].mxu1 }
 0x7d9   : > { %v1238_v53 = vmul.f32 %v1235_v51, %v1235_v51 }
 0x7db   : > { %v1239_v54 = vmul.f32 %v1238_v53, %v1235_v51 }
 0x7dd   : > { %v1240_v55 = vmul.f32 0.044715, %v1239_v54 }
 0x7df   : > { %v1241_v56 = vadd.f32 %v1240_v55, %v1235_v51 }
 0x7e1   : > { %v1242_v57 = vmul.f32 0.7978846, %v1241_v56 }
 0x7e3   : > { %1930 = vtanh.f32 %v1242_v57 }
 0x7ed   : > { %v1931_v58 = vpop.eup %1930 }
 0x7ee   : > { %v1244_v59 = vadd.f32 1.0, %v1931_v58 }
 0x7f0   : > { %v1245_v60 = vmul.f32 0.5, %v1244_v59 }
 0x7f2   : > { %v1246_v4 = vmul.f32 %v1245_v60, %v1235_v51 }
 0x7f4   : > { %1789 = vmatmul.mubr.f32.vlgmr.msra.gmra.mrb[2].mxu0 %v1246_v4 }
 0x8c7   : > { %v1336_v62 = vpop.f32.mrb[2].mxu0 }
 0x8c8   : > { %v1337_v63 = vadd.f32 %v1649_v61, %v1336_v62  ;;  %v1790_v0 = vpop.f32.mrb[3].mxu0 }
 0x8ca   : > { %v1340_v1 = vadd.f32 %v1337_v63, %v1153_v27 }
 0x8cc   : > { %v1341_v2 = vsel %vm622_vm2, %v1340_v1, 0.0 }
 0x8cd   : > { %1342 = vadd.xlane.f32.xlu0 %v1341_v2 }
 0x95a   : > { %v1343_v3 = vpop.xlane.xlu0 %1342 }
 0x95b   : > { %v1344_v5 = vmul.f32 0.03125, %v1343_v3 }
 0x95d   : > { %v1345_v6 = vsub.f32 %v1340_v1, %v1344_v5 }
 0x95f   : > { %v1346_v7 = vmul.f32 %v1345_v6, %v1345_v6 }
 0x961   : > { %v1347_v8 = vsel %vm622_vm2, %v1346_v7, 0.0 }
 0x962   : > { %1348 = vadd.xlane.f32.xlu0 %v1347_v8 }
 0x963   : > { %1947 = shalt.err (!%p1944_p9)
}
 0x964   : > { %s1948_s2 = scalar_lea.hbm %s2405_s18, 256  ;;  %s1952_s4 = scalar_lea.hbm %s2565_s14, 1024 }
 0x965   : > { %p1949_p10 = scmp.ne.s32.totalorder %s2405_s18, %s1948_s2  ;;  %p1953_p13 = scmp.lt.u32.totalorder %s2405_s18, %s2565_s14 }
 0x966   : > { %p1954_p0 = scmp.lt.u32.totalorder %s1952_s4, %s1948_s2  ;;  %p1956_p2 = scmp.lt.u32.totalorder %s1948_s2, %s2405_s18 }
 0x967   : > { %p1950_p11 = pnand %p1949_p10, %p2191_p3 }
 0x968   : > { %p1955_p1 = por %p1954_p0, %p1953_p13 }
 0x969   : > { %p1951_p12 = pneg %p1950_p11 }
 0x96a   : > { %p1957_p4 = por %p1956_p2, %p1955_p1 }
 0x96c   : > { %p1958_p5 = pnand %p1957_p4, %p1951_p12 }
 0x96e   : > { %1961 = shalt.err (!%p1958_p5)
}
 0x96f   : > { %s2072_s22 = smov 128   ;;  %s2073_s0 = smov 8   ;;  %v1356_v12 = vsub.s32 2, %v2355_v18  ;;  %v1361_v13 = vsub.s32 3, %v2355_v18 }
 0x970   : > { %1834 = dma.vmem_to_hbm [thread:$0]  (%p2191_p3), %s2400_s13, 256, %s2405_s18, %s1372_s19, %s2072_s22, %s2072_s22, %s2073_s0  }
 0x971   : > { %s1652_s16 = sshll.u32 %s2044_s24, 1  ;;  %v1357_v14 = vrot.slane %v2359_v20, %v1356_v12  ;;  %v1362_v17 = vrot.slane %v2359_v20, %v1361_v13  ;;  %s1387_s21 = sshll.u32 %s2274_s17, 4  ;;  %s2443_s21 = int_to_ptr.vmem [resolvable:$true] %s1387_s21 }
 0x972   : > { %s1383_s20 = sadd.s32 %s2561_s27, %s1652_s16  ;;  %s2566_s19 = sld [smem:[#allocation27_spill]] }
 0x973   : > { %s1653_s13 = sshll.u32 %s1383_s20, 7  ;;  %s1367_s24 = scalar_lea.sflag [#allocation4], %s2562_s11 }
 0x974   : > { %s1962_s27 = scalar_lea.vmem %s2443_s21, 128  ;;  %s2074_s29 = smov [#allocation3]  }
 0x975   : > { %p1963_p6 = scmp.ne.s32.totalorder %s2443_s21, %s1962_s27  ;;  %s1966_s12 = sshll.u32 %s2074_s29, 4  ;;  %s1967_s12 = int_to_ptr.vmem [resolvable:$false] %s1966_s12 }
 0x976   : > { %s1968_s30 = scalar_lea.vmem %s1967_s12, 256  ;;  %p1969_p10 = scmp.lt.s32.totalorder %s2443_s21, %s1967_s12 }
 0x977   : > { %p1964_p7 = pnand %p1963_p6, %p2191_p3  ;;  %p1970_p11 = scmp.lt.s32.totalorder %s1968_s30, %s1962_s27 }
 0x978   : > { %s2441_s15 = scalar_lea.hbm %s2566_s19, %s1653_s13 }
 0x979   : > { %p1965_p9 = pneg %p1964_p7  ;;  %p1971_p12 = por %p1970_p11, %p1969_p10 }
 0x97b   : > { %p1972_p13 = pnand %p1971_p12, %p1965_p9 }
 0x9ef   : > { %v1349_v9 = vpop.xlane.xlu0 %1348 }
 0x9f0   : > { %v1350_v10 = vmul.f32 0.03125, %v1349_v9 }
 0x9f2   : > { %v1351_v11 = vadd.f32 1e-12, %v1350_v10 }
 0x9f4   : > { %1932 = vrsqrt.f32 %v1351_v11 }
 0x9fe   : > { %v1933_v15 = vpop.eup %1932 }
 0x9ff   : > { %v1353_v16 = vmul.f32 %v1933_v15, %v1345_v6 }
 0xa01   : > { %v1358_v19 = vmul.f32 %v1357_v14, %v1353_v16 }
 0xa03   : > { %v1363_v21 = vadd.f32 %v1362_v17, %v1358_v19 }
 0xa05   : > { %1364 = vst.msk [vmem:[#allocation2] sm:$0xff] %vm622_vm2, %v1363_v21  ;;  %1365 = vst.msk [vmem:[%s2274_s17] sm:$0xff] %vm622_vm2, %v1363_v21 }
 0xa06   : > { %1975 = shalt.err (!%p1972_p13)
}
 0xa07   : > { %s1976_s17 = scalar_lea.hbm %s2441_s15, 128  ;;  %s1980_s1 = scalar_lea.hbm %s2566_s19, 512 }
 0xa08   : > { %p1977_p0 = scmp.ne.s32.totalorder %s2441_s15, %s1976_s17  ;;  %p1981_p4 = scmp.lt.u32.totalorder %s2441_s15, %s2566_s19 }
 0xa09   : > { %p1982_p5 = scmp.lt.u32.totalorder %s1980_s1, %s1976_s17  ;;  %p1984_p7 = scmp.lt.u32.totalorder %s1976_s17, %s2441_s15 }
 0xa0a   : > { %p1978_p1 = pnand %p1977_p0, %p2191_p3 }
 0xa0b   : > { %p1983_p6 = por %p1982_p5, %p1981_p4 }
 0xa0c   : > { %p1979_p2 = pneg %p1978_p1 }
 0xa0d   : > { %p1985_p9 = por %p1984_p7, %p1983_p6 }
 0xa0f   : > { %p1986_p10 = pnand %p1985_p9, %p1979_p2 }
 0xa11   : > { %1989 = shalt.err (!%p1986_p10)
}
 0xa12   : > { %1833 = dma.vmem_to_hbm [thread:$0]  (%p2191_p3), %s2443_s21, 128, %s2441_s15, %s1367_s24  }
 0xa13 PF: > { %s2567_s5 = sld [smem:[#allocation15_spill]]  ;;  %s2568_s26 = sld [smem:[#allocation9_spill]] }
 0xa19   : > { %p1844_p11 = scmp.ge.s32.totalorder %s2567_s5, 2  ;;  %s1417_s0 = sand.u32 1, %s2568_s26  }
 0xa1a   : > { %s1418_s16 = scalar_lea.sflag [#allocation4], %s1417_s0 }
 0xa1b   : > { %p1838_p12 = pnand %p1844_p11, %p2200_p8 }
 0xa1d   : > { %2023 = dma.done.wait (!%p1838_p12), %s1418_s16, 128  }
 0xa1e   : > { %2025 = vsyncadd (!%p1838_p12), %s1418_s16, 4294967168  ;;  %s1427_s20 = scalar_lea.sflag [#allocation6], %s1417_s0 }
 0xa1f   : > { %2027 = dma.done.wait (!%p1838_p12), %s1427_s20, 256  }
 0xa20   : > { %2029 = vsyncadd (!%p1838_p12), %s1427_s20, 4294967040  ;;  %s29_s28 = sadd.s32 1, %s2567_s5   ;;  %s2570_s21 = sld [smem:[#allocation10_spill]] }
 0xa21   : > { %p26_p13 = scmp.ge.s32.totalorder %s29_s28, 6   ;;  %s2571_s22 = sld [smem:[#allocation11_spill]] }
 0xa22   : > { %s2572_s23 = sld [smem:[#allocation20_spill]]  ;;  %s2573_s24 = sld [smem:[#allocation13_spill]] }
 0xa23   : > { %s2574_s25 = sld [smem:[#allocation14_spill]]  ;;  %s2575_s26 = sld [smem:[#allocation16_spill]] }
 0xa24   : > { %s2576_s27 = sld [smem:[#allocation18_spill]]  ;;  %28 = sbr.rel (!%p26_p13) target bundleno = 15 (0xf), region = 151 }
 0xa2b   :  { %1432 = vsyncpa [#allocation4], 1 }
 0xa2c   :  { %1434 = vsyncpa [#allocation4 + $0x1], 1 }
 0xa2d   :  { %1435 = vsyncpa [#allocation6], 1 }
 0xa2e   :  { %1437 = vsyncpa [#allocation6 + $0x1], 1 }

</bundles_post_ra>
